<compile_context>
chip_gen: v6e
topology: v6e:2x2x1
jax: 0.10.0
libtpu: 0.0.40
codegen_flags: <defaults>
</compile_context>

<pallas_src>
import jax
import jax.numpy as jnp
from jax.experimental import pallas as pl
from jax.experimental.pallas import tpu as pltpu


BN_EPS = 1e-5
OUTPUT_RANGE = 6.0   # module constant (requires_grad=False Parameter [6])
OUTPUT_SHIFT = -3.0  # module constant (requires_grad=False Parameter [-3])


def classifier_v1_kernel(x_ref, w1_ref, aux_ref, o_ref):
    # x_ref  : (B, F)  input in native layout (batch on sublanes)
    # w1_ref : (F, H)  W1^T with BN gamma folded in (rows scaled by gamma)
    # aux_ref: (3, H)  row0 = fused_b1 (= W1 @ beta + b1), row1 = w2, [2,0] = b2
    # o_ref  : (B, 1)  output, same convention as the PyTorch module
    x = x_ref[...]                                            # (B, F)

    # ---- BatchNorm1d (training-mode forward: batch mean / biased batch var).
    # Batch axis is the sublane axis -> sublane reductions.
    mean = jnp.mean(x, axis=0, keepdims=True)                 # (1, F)
    centered = x - mean
    var = jnp.mean(centered * centered, axis=0, keepdims=True)  # biased var
    ns = centered * jax.lax.rsqrt(var + BN_EPS)               # (B, F); gamma/beta folded host-side

    # ---- Dropout ----
    # TODO(synk): stochastic dropout omitted (identity == eval mode / p=0).

    # ---- linear_1 + ReLU: y1 = relu(ns @ (gamma*W1)^T + fused_b1) ----
    aux = aux_ref[...]                                        # (3, H)
    fused_b1 = aux[0:1, :]                                    # (1, H)
    w2_row = aux[1:2, :]                                      # (1, H)
    b2 = aux[2:3, 0:1]                                        # (1, 1)
    y1 = jnp.dot(ns, w1_ref[...], preferred_element_type=jnp.float32)
    y1 = jnp.maximum(y1 + fused_b1, 0.0)                      # (B, H)

    # ---- linear_2 (out_features = 1): VPU mul + lane reduce, no MXU pass ----
    z = jnp.sum(y1 * w2_row, axis=1, keepdims=True) + b2      # (B, 1)

    # ---- sigmoid + fixed output affine: 6*sigmoid(z) - 3 == 3*tanh(z/2) ----
    o_ref[...] = 3.0 * jnp.tanh(0.5 * z)


def fold_params(params):
    """One-time parameter folding (NOT on the per-call hot path).

    normed @ W1^T + b1
      = (centered*inv_std) @ (gamma[:,None] * W1)^T + (W1 @ beta + b1)
    """
    gamma = params["bn_gamma"]                                # (F,)
    beta = params["bn_beta"]                                  # (F,)
    w1 = params["w1"]                                         # (H, F) PyTorch layout
    b1 = params["b1"]                                         # (H,)
    w2 = params["w2"]                                         # (1, H)
    b2 = params["b2"]                                         # (1,)
    H = w1.shape[0]

    w1t_g = (w1 * gamma[None, :]).T                           # (F, H) gamma folded, pre-transposed
    fused_b1 = w1 @ beta + b1                                 # (H,)   beta folded

    # Pack the small params into one lane-oriented (3, H) tile -> one DMA.
    aux = jnp.zeros((3, H), jnp.float32)
    aux = aux.at[0].set(fused_b1)
    aux = aux.at[1].set(w2[0])
    aux = aux.at[2, 0].set(b2[0])
    return {"w1t_g": w1t_g, "aux": aux}


def classifier_v1_forward(x, folded):
    """x: (B, fusion_dim) f32 in native layout.  Returns (B, 1) f32."""
    B, _ = x.shape
    vmem = pl.BlockSpec(memory_space=pltpu.MemorySpace.VMEM)
    return pl.pallas_call(
        classifier_v1_kernel,
        out_shape=jax.ShapeDtypeStruct((B, 1), jnp.float32),
        in_specs=[vmem, vmem, vmem],
        out_specs=vmem,
    )(x, folded["w1t_g"], folded["aux"])


def init_params(key, fusion_dim, clf_hidden_dim):
    """Deterministic synthetic parameters matching the module's __init__ shapes."""
    k1, k2, k3, k4 = jax.random.split(key, 4)
    lim1 = 1.0 / jnp.sqrt(fusion_dim)
    lim2 = 1.0 / jnp.sqrt(clf_hidden_dim)
    return {
        "bn_gamma": jnp.ones((fusion_dim,), jnp.float32),
        "bn_beta": jnp.zeros((fusion_dim,), jnp.float32),
        "w1": jax.random.uniform(k1, (clf_hidden_dim, fusion_dim), jnp.float32,
                                 -lim1, lim1),
        "b1": jax.random.uniform(k2, (clf_hidden_dim,), jnp.float32, -lim1, lim1),
        "w2": jax.random.uniform(k3, (1, clf_hidden_dim), jnp.float32, -lim2, lim2),
        "b2": jax.random.uniform(k4, (1,), jnp.float32, -lim2, lim2),
    }


def reference_forward(x, params):
    """Plain-JAX reference matching the PyTorch forward (training-mode BN)."""
    mean = jnp.mean(x, axis=0, keepdims=True)
    var = jnp.mean((x - mean) ** 2, axis=0, keepdims=True)
    normed = (x - mean) / jnp.sqrt(var + BN_EPS) * params["bn_gamma"] + params["bn_beta"]
    y1 = jnp.maximum(normed @ params["w1"].T + params["b1"], 0.0)
    y2 = jax.nn.sigmoid(y1 @ params["w2"].T + params["b2"])
    return y2 * OUTPUT_RANGE + OUTPUT_SHIFT


if __name__ == "__main__":
    batch = 8
    fusion_dim = 32
    clf_hidden_dim = 32

    key = jax.random.PRNGKey(0)
    kx, kp = jax.random.split(key)
    x = jax.random.normal(kx, (batch, fusion_dim), jnp.float32)
    params = init_params(kp, fusion_dim, clf_hidden_dim)

    folded = fold_params(params)                 # one-time, off the hot path
    out = classifier_v1_forward(x, folded)
    out = jax.block_until_ready(out)

    ref = reference_forward(x, params)
    assert out.shape == (batch, 1), out.shape
    # Exact math path (3*tanh(z/2) identity) -> tight tolerance.
    assert jnp.allclose(out, ref, atol=1e-5, rtol=1e-5), (out, ref)

    print("KERNEL_OK")
</pallas_src>

<mosaic_0001>
module attributes {stable_mosaic.version = 11 : i64} {
  func.func @classifier_v1_kernel(%arg0: memref<8x32xf32, #tpu.memory_space<vmem>>, %arg1: memref<32x32xf32, #tpu.memory_space<vmem>>, %arg2: memref<3x32xf32, #tpu.memory_space<vmem>>, %arg3: memref<8x1xf32, #tpu.memory_space<vmem>>) attributes {dimension_semantics = [], scalar_prefetch = 0 : i64, scratch_operands = 0 : i64, tpu.core_type = #tpu.core_type<tc>} {
    %c0 = arith.constant 0 : index
    %c0_0 = arith.constant 0 : index
    %0 = vector.load %arg0[%c0, %c0_0] : memref<8x32xf32, #tpu.memory_space<vmem>>, vector<8x32xf32>
    %cst = arith.constant dense<0.000000e+00> : vector<32xf32>
    %1 = vector.multi_reduction <add>, %0, %cst [0] : vector<8x32xf32> to vector<32xf32>
    %2 = vector.shape_cast %1 : vector<32xf32> to vector<1x32xf32>
    %cst_1 = arith.constant 8.000000e+00 : f32
    %3 = vector.broadcast %cst_1 : f32 to vector<1x32xf32>
    %4 = arith.divf %2, %3 : vector<1x32xf32>
    %5 = vector.broadcast %4 : vector<1x32xf32> to vector<8x32xf32>
    %6 = arith.subf %0, %5 : vector<8x32xf32>
    %7 = arith.mulf %6, %6 : vector<8x32xf32>
    %cst_2 = arith.constant dense<0.000000e+00> : vector<32xf32>
    %8 = vector.multi_reduction <add>, %7, %cst_2 [0] : vector<8x32xf32> to vector<32xf32>
    %9 = vector.shape_cast %8 : vector<32xf32> to vector<1x32xf32>
    %cst_3 = arith.constant 8.000000e+00 : f32
    %10 = vector.broadcast %cst_3 : f32 to vector<1x32xf32>
    %11 = arith.divf %9, %10 : vector<1x32xf32>
    %cst_4 = arith.constant 9.99999974E-6 : f32
    %12 = vector.broadcast %cst_4 : f32 to vector<1x32xf32>
    %13 = arith.addf %11, %12 : vector<1x32xf32>
    %14 = math.rsqrt %13 : vector<1x32xf32>
    %15 = vector.broadcast %14 : vector<1x32xf32> to vector<8x32xf32>
    %16 = arith.mulf %6, %15 : vector<8x32xf32>
    %c0_5 = arith.constant 0 : index
    %c0_6 = arith.constant 0 : index
    %17 = vector.load %arg2[%c0_5, %c0_6] : memref<3x32xf32, #tpu.memory_space<vmem>>, vector<3x32xf32>
    %18 = vector.extract_strided_slice %17 {offsets = [0, 0], sizes = [1, 32], strides = [1, 1]} : vector<3x32xf32> to vector<1x32xf32>
    %19 = vector.extract_strided_slice %17 {offsets = [1, 0], sizes = [1, 32], strides = [1, 1]} : vector<3x32xf32> to vector<1x32xf32>
    %20 = vector.extract_strided_slice %17 {offsets = [2, 0], sizes = [1, 1], strides = [1, 1]} : vector<3x32xf32> to vector<1x1xf32>
    %c0_7 = arith.constant 0 : index
    %c0_8 = arith.constant 0 : index
    %21 = vector.load %arg1[%c0_7, %c0_8] : memref<32x32xf32, #tpu.memory_space<vmem>>, vector<32x32xf32>
    %cst_9 = arith.constant dense<0.000000e+00> : vector<8x32xf32>
    %22 = tpu.matmul %16, %21, %cst_9 {dimension_numbers = #tpu.dot_dimension_numbers<[1], [0], [0], [1], [0, 0, 1, 1], [], []>} : vector<8x32xf32>, vector<32x32xf32>, vector<8x32xf32> -> vector<8x32xf32>
    %23 = vector.broadcast %18 : vector<1x32xf32> to vector<8x32xf32>
    %24 = arith.addf %22, %23 : vector<8x32xf32>
    %cst_10 = arith.constant 0.000000e+00 : f32
    %25 = vector.broadcast %cst_10 : f32 to vector<8x32xf32>
    %26 = arith.maximumf %24, %25 : vector<8x32xf32>
    %27 = vector.broadcast %19 : vector<1x32xf32> to vector<8x32xf32>
    %28 = arith.mulf %26, %27 : vector<8x32xf32>
    %cst_11 = arith.constant dense<0.000000e+00> : vector<8xf32>
    %29 = vector.multi_reduction <add>, %28, %cst_11 [1] : vector<8x32xf32> to vector<8xf32>
    %30 = vector.shape_cast %29 : vector<8xf32> to vector<8x1xf32>
    %31 = vector.broadcast %20 : vector<1x1xf32> to vector<8x1xf32>
    %32 = arith.addf %30, %31 : vector<8x1xf32>
    %cst_12 = arith.constant 5.000000e-01 : f32
    %33 = vector.broadcast %cst_12 : f32 to vector<8x1xf32>
    %34 = arith.mulf %33, %32 : vector<8x1xf32>
    %35 = math.tanh %34 : vector<8x1xf32>
    %cst_13 = arith.constant 3.000000e+00 : f32
    %36 = vector.broadcast %cst_13 : f32 to vector<8x1xf32>
    %37 = arith.mulf %36, %35 : vector<8x1xf32>
    %c0_14 = arith.constant 0 : index
    %c0_15 = arith.constant 0 : index
    %38 = vector.load %arg3[%c0_14, %c0_15] : memref<8x1xf32, #tpu.memory_space<vmem>>, vector<8x1xf32>
    tpu.vector_store %arg3[%c0_14, %c0_15], %37 {strides = array<i32>} : memref<8x1xf32, #tpu.memory_space<vmem>>, vector<8x1xf32>,
    return
  }
}

</mosaic_0001>

<bundles_post_ra>
// kernel: tpu_custom_call.1
= control target key start
LH: loop header
LB: loop body
LE: loop exit
PB: predicated region body
PF: predicated region fallthrough
CT: control target
= control target key end

     0   :  { %8 = vsyncpa [#allocation3], 0  ;;  %s317_s0 = inlined_call_operand.hbm [shape: f32[8,32], index: 0, kind: input, shape index: {}]   ;;  %s318_s1 = inlined_call_operand.hbm [shape: f32[32,32], index: 1, kind: input, shape index: {}]   ;;  %s319_s2 = inlined_call_operand.hbm [shape: f32[3,32], index: 2, kind: input, shape index: {}]   ;;  %s320_s3 = inlined_call_operand.vmem [shape: f32[8,1], index: 3, kind: output, shape index: {}]  }
   0x1   :  { %9 = vsyncpa [#allocation5], 0  ;;  %s274_s12 = smov [#allocation4]  }
   0x2   :  { %s25_s13 = sshll.u32 %s274_s12, 4  ;;  %s26_s13 = int_to_ptr.vmem [resolvable:$true] %s25_s13 }
   0x3   :  { %s218_s14 = scalar_lea.vmem %s26_s13, 512  ;;  %p223_p1 = scmp.lt.s32.totalorder %s26_s13, %s26_s13 }
   0x4   :  { %p219_p0 = scmp.ne.s32.totalorder %s26_s13, %s218_s14  ;;  %p224_p2 = scmp.lt.s32.totalorder %s218_s14, %s218_s14 }
   0x6   :  { %p225_p3 = por %p224_p2, %p223_p1 }
   0x8   :  { %p226_p4 = pnand %p225_p3, %p219_p0 }
   0xa   :  { %229 = shalt.err (!%p226_p4)
}
   0xb   :  { %s275_s15 = smov 128   ;;  %s276_s16 = smov 8  }
   0xc   :  { %31 = dma.hbm_to_vmem [thread:$0]  %s318_s1, 512, %s26_s13, [#allocation5], %s275_s15, %s275_s15, %s276_s16  }
   0xd   :  { %s277_s19 = smov [#allocation2]   ;;  %s278_s21 = smov [#allocation6]  }
   0xe   :  { %s16_s20 = sshll.u32 %s277_s19, 4  ;;  %s38_s22 = sshll.u32 %s278_s21, 4  ;;  %s17_s20 = int_to_ptr.vmem [resolvable:$true] %s16_s20  ;;  %s39_s22 = int_to_ptr.vmem [resolvable:$true] %s38_s22 }
   0xf   :  { %s238_s23 = scalar_lea.vmem %s17_s20, 128  ;;  %p243_p6 = scmp.lt.s32.totalorder %s17_s20, %s17_s20 }
  0x10   :  { %p239_p5 = scmp.ne.s32.totalorder %s17_s20, %s238_s23  ;;  %p244_p7 = scmp.lt.s32.totalorder %s238_s23, %s238_s23 }
  0x12   :  { %p245_p8 = por %p244_p7, %p243_p6 }
  0x14   :  { %p246_p9 = pnand %p245_p8, %p239_p5 }
  0x16   :  { %249 = shalt.err (!%p246_p9)
}
  0x17   :  { %19 = dma.hbm_to_vmem [thread:$0]  %s317_s0, 128, %s17_s20, [#allocation3]  }
  0x18   :  { %s258_s26 = scalar_lea.vmem %s39_s22, 64  ;;  %p263_p11 = scmp.lt.s32.totalorder %s39_s22, %s39_s22 }
  0x19   :  { %p259_p10 = scmp.ne.s32.totalorder %s39_s22, %s258_s26  ;;  %p264_p12 = scmp.lt.s32.totalorder %s258_s26, %s258_s26 }
  0x1b   :  { %p265_p13 = por %p264_p12, %p263_p11 }
  0x1d   :  { %p266_p0 = pnand %p265_p13, %p259_p10 }
  0x1f   :  { %269 = shalt.err (!%p266_p0)
}
  0x20   :  { %41 = dma.hbm_to_vmem [thread:$0]  %s319_s2, 64, %s39_s22, [#allocation5]  }
  0x21   :  { %270 = dma.done.wait [#allocation3], 128  }
  0x22   :  { %271 = vsyncadd [#allocation3], 4294967168 }
  0x23   :  { %272 = dma.done.wait [#allocation5], 576  }
  0x24   :  { %273 = vsyncadd [#allocation5], 4294966720  ;;  %v279_v0 = vmov 0.0   ;;  %vm280_vm0 = vmmov 0   ;;  %vm52_vm1 = vcmask 261120   ;;  %v79_v1 = vld [vmem:[#allocation4 + $0x18] sm:$0xff]  ;;  %v80_v27 = vlaneseq }
  0x25   :  { %188 = vmatprep.subr.mxu0 %v279_v0  ;;  %196 = vmatprep.mubr.msk.f32.mxu0 %vm280_vm0, %v279_v0  ;;  %v78_v2 = vld [vmem:[#allocation4 + $0x10] sm:$0xff]  ;;  %v51_v3 = vld [vmem:[#allocation2] sm:$0xff]  ;;  %v77_v4 = vld [vmem:[#allocation4 + $0x8] sm:$0xff]  ;;  %vm174_vm2 = vcmask 7168  }
  0x26   :  { %189 = vmatpush3.msra.mxu0 %v79_v1  ;;  %v53_v5 = vsel %vm52_vm1, %v51_v3, 0.0  ;;  %v76_v7 = vld [vmem:[#allocation4] sm:$0xff]  ;;  %v81_v28 = vshrl.u32 %v80_v27, 7 }
  0x27   :  { %190 = vmatprep.subr.mxu0 %v279_v0  ;;  %v54_v6 = vrot.slane %v53_v5, 4  ;;  %v75_v30 = vld [vmem:[#allocation6] sm:$0x7] }
  0x28   :  { %191 = vmatpush3.msra.mxu0 %v78_v2  ;;  %v82_v29 = vsub.s32 0, %v81_v28  ;;  %v160_v32 = vsub.s32 1, %v81_v28  ;;  %v168_v40 = vsub.s32 2, %v81_v28 }
  0x29   :  { %192 = vmatprep.subr.mxu0 %v279_v0  ;;  %v55_v8 = vadd.f32 %v54_v6, %v53_v5 }
  0x2a   :  { %193 = vmatpush3.msra.mxu0 %v77_v4  ;;  %v83_v31 = vrot.slane %v75_v30, %v82_v29  ;;  %v161_v35 = vrot.slane %v75_v30, %v160_v32  ;;  %v169_v41 = vrot.slane %v75_v30, %v168_v40 }
  0x2b   :  { %194 = vmatprep.subr.mxu0 %v279_v0  ;;  %v56_v9 = vrot.slane %v55_v8, 2 }
  0x2c   :  { %195 = vmatpush3.msra.mxu0 %v76_v7 }
  0x2d   :  { %v57_v10 = vadd.f32 %v56_v9, %v55_v8 }
  0x2f   :  { %v58_v11 = vrot.slane %v57_v10, 1 }
  0x31   :  { %v59_v12 = vadd.f32 %v58_v11, %v57_v10 }
  0x33   :  { %v61_v13 = vmul.f32 0.125, %v59_v12 }
  0x35   :  { %v62_v14 = vsub.f32 %v51_v3, %v61_v13 }
  0x37   :  { %v63_v15 = vmul.f32 %v62_v14, %v62_v14 }
  0x39   :  { %v64_v16 = vsel %vm52_vm1, %v63_v15, 0.0 }
  0x3a   :  { %v65_v17 = vrot.slane %v64_v16, 4 }
  0x3c   :  { %v66_v18 = vadd.f32 %v65_v17, %v64_v16 }
  0x3e   :  { %v67_v19 = vrot.slane %v66_v18, 2 }
  0x40   :  { %v68_v20 = vadd.f32 %v67_v19, %v66_v18 }
  0x42   :  { %v69_v21 = vrot.slane %v68_v20, 1 }
  0x44   :  { %v70_v22 = vadd.f32 %v69_v21, %v68_v20 }
  0x46   :  { %v71_v23 = vmul.f32 0.125, %v70_v22 }
  0x48   :  { %v72_v24 = vadd.f32 1e-05, %v71_v23 }
  0x4a   :  { %206 = vrsqrt.f32 %v72_v24 }
  0x57   :  { %v207_v25 = vpop.eup %206 }
  0x58   :  { %v74_v26 = vmul.f32 %v207_v25, %v62_v14 }
  0x5a   :  { %197 = vmatmul.mubr.msk.f32.vlgmr.msra.gmra.mxu0 %vm52_vm1, %v74_v26 }
 0x11a   :  { %v153_v33 = vpop.f32.mrf.mxu0 }
 0x11b   :  { %v154_v34 = vadd.f32 %v153_v33, %v83_v31 }
 0x11c   :  { %v198_v36 = vpop.f32.mrf.mxu0 }
 0x11d   :  { %v157_v37 = vmax.f32 %v154_v34, 0.0 }
 0x11f   :  { %v162_v38 = vmul.f32 %v161_v35, %v157_v37 }
 0x121   :  { %v163_v39 = vsel %vm52_vm1, %v162_v38, 0.0 }
 0x122   :  { %164 = vadd.xlane.f32.xlu0 %v163_v39 }
 0x1ab   :  { %v165_v42 = vpop.xlane.xlu0 %164 }
 0x1ac   :  { %v170_v43 = vadd.f32 %v169_v41, %v165_v42 }
 0x1ae   :  { %v171_v44 = vmul.f32 0.5, %v170_v43 }
 0x1b0   :  { %208 = vtanh.f32 %v171_v44 }
 0x1bd   :  { %v209_v45 = vpop.eup %208 }
 0x1be   :  { %v173_v46 = vmul.f32 3.0, %v209_v45 }
 0x1c0   :  { %175 = vst.msk [vmem:[%s320_s3] sm:$0xff] %vm174_vm2, %v173_v46 }
 0x1c1   :  { %180 = vsyncpa [#allocation3], 1 }
 0x1c2   :  { %181 = vsyncpa [#allocation5], 1 }

</bundles_post_ra>
